<compile_context>
chip_gen: v7x
topology: tpu7x:2x2x1
jax: 0.10.0
libtpu: 0.0.40
codegen_flags: <defaults>
</compile_context>

<pallas_src>
import math
import numpy as np

import jax
import jax.numpy as jnp
from jax.experimental import pallas as pl
from jax.experimental.pallas import tpu as pltpu


# ----------------------------- Pallas kernel ------------------------------- #
def _mixconv_kernel(x_ref, w_ref, scale_ref, shift_ref, o_ref):
    # x_ref:     (1, 1, TH+2, W+2, c1)  NHWC spatial tile with a 1-pixel halo
    # w_ref:     (3, 3, c1, c2p)        fused per-tap weights (k=1 branch in the
    #                                   centre tap, k=3 branch in all 9 taps)
    # scale_ref: (1, c2p)               folded eval-mode BatchNorm scale
    # shift_ref: (1, c2p)               folded eval-mode BatchNorm shift
    # o_ref:     (1, c2p, TH*W)         lane-dense (channels-major) output tile
    th = x_ref.shape[2] - 2
    wsp = x_ref.shape[3] - 2
    c1 = x_ref.shape[4]
    c2p = o_ref.shape[1]

    # Accumulate / post-process in f32 regardless of the HBM operand dtype.
    x_slab = x_ref[0, 0].astype(jnp.float32)           # (TH+2, W+2, c1)
    w_all = w_ref[...].astype(jnp.float32)              # (3, 3, c1, c2p)

    # 3x3 conv (+ fused 1x1 branch) as a sum of 9 shifted-slice matmuls on the
    # MXU — no im2col blow-up ever touches HBM.  Statically unrolled taps.
    acc = jnp.zeros((th * wsp, c2p), jnp.float32)
    for dh in range(3):
        for dw in range(3):
            xs = x_slab[dh:dh + th, dw:dw + wsp, :].reshape(th * wsp, c1)
            acc = acc + jnp.dot(xs, w_all[dh, dw],
                                preferred_element_type=jnp.float32)

    # Folded eval-mode BatchNorm + SiLU (f32 epilogue).
    z = acc * scale_ref[...] + shift_ref[...]
    z = z * jax.nn.sigmoid(z)

    # Store channels-major so the last (lane) dim is TH*W (multiple of 128):
    # unmasked dense stores instead of c2-wide masked partial stores.
    o_ref[0] = z.T.astype(o_ref.dtype)


# ------------------------------ glue helpers ------------------------------- #
def _grouped_to_dense(w, c1, groups):
    """(c_out, c1//groups, kh, kw) grouped weight -> equivalent block-diagonal
    dense (c_out, c1, kh, kw) weight."""
    # TODO(synk): for groups > 1 run one matmul per group (grid axis over groups)
    # instead of this zero-padded expansion (wasted FLOPs at real MixConv sizes).
    c_out, cin_g, kh, kw = w.shape
    cout_g = c_out // groups
    dense = jnp.zeros((c_out, c1, kh, kw), w.dtype)
    for g in range(groups):
        dense = dense.at[g * cout_g:(g + 1) * cout_g,
                         g * cin_g:(g + 1) * cin_g].set(
            w[g * cout_g:(g + 1) * cout_g])
    return dense


def _pick_tile_h(H, W, c1, itemsize, vmem_budget_bytes=4 * 1024 * 1024):
    """Largest divisor of H whose (TH+2, W+2, c1) halo slab fits the per-buffer
    budget and whose flattened tile TH*W keeps the output store lane-aligned."""
    for th in range(H, 0, -1):
        if H % th:
            continue
        slab_bytes = (th + 2) * (W + 2) * c1 * itemsize
        if slab_bytes > vmem_budget_bytes and th > 1:
            continue
        if th != H and (th * W) % 128 != 0:
            continue
        return th
    return H


def mixconv2d_forward(x_nchw, w1_g, w3_g, groups,
                      bn_gamma, bn_beta, bn_mean, bn_var,
                      eps=1e-5, tile_h=None, operand_dtype=jnp.bfloat16):
    """MixConv2d forward: convs (k=1, k=3) -> concat -> BN(eval) -> SiLU."""
    N, c1, H, W = x_nchw.shape
    c_a = w1_g.shape[0]
    c_b = w3_g.shape[0]
    c2 = c_a + c_b
    c2p = -(-c2 // 8) * 8                       # pad out-channels to sublane multiple

    if tile_h is None:
        tile_h = _pick_tile_h(H, W, c1, np.dtype(operand_dtype).itemsize)
    assert H % tile_h == 0, f"tile_h={tile_h} must divide H={H}"
    assert tile_h == H or (tile_h * W) % 128 == 0, (
        "tile_h*W must be a multiple of 128 (lane-dense output tiles)")
    n_h = H // tile_h

    # NCHW -> NHWC, pad spatially by 1 ('same' padding for the 3x3 branch).
    x_nhwc = jnp.transpose(x_nchw, (0, 2, 3, 1))
    xp = jnp.pad(x_nhwc, ((0, 0), (1, 1), (1, 1), (0, 0)))
    # Overlapping H slabs (+1 halo row each side): (N, n_h, TH+2, W+2, c1).
    slabs = jnp.stack([xp[:, t * tile_h: t * tile_h + tile_h + 2]
                       for t in range(n_h)], axis=1).astype(operand_dtype)

    # Fused per-tap weight (3, 3, c1, c2p): output columns [0, c_a) are the k=1
    # branch (centre tap only), [c_a, c2) are the k=3 branch -> torch.cat order
    # falls out of a single matmul, no in-kernel concatenate.
    w1d = _grouped_to_dense(w1_g, c1, groups[0])[:, :, 0, 0]        # (c_a, c1)
    w3d = _grouped_to_dense(w3_g, c1, groups[1])                    # (c_b, c1, 3, 3)
    w_fused = jnp.zeros((3, 3, c1, c2p), jnp.float32)
    w_fused = w_fused.at[:, :, :, c_a:c2].set(jnp.transpose(w3d, (2, 3, 1, 0)))
    w_fused = w_fused.at[1, 1, :, :c_a].set(w1d.T)

    # Fold eval-mode BatchNorm into per-channel scale/shift (pad channels -> 0).
    scale_c = bn_gamma / jnp.sqrt(bn_var + eps)
    shift_c = bn_beta - bn_mean * scale_c
    scale = jnp.zeros((1, c2p), jnp.float32).at[0, :c2].set(scale_c)
    shift = jnp.zeros((1, c2p), jnp.float32).at[0, :c2].set(shift_c)

    # Generation-aware VMEM limit (v7x: 64 MiB physical; v5e/v6e: 128 MiB).
    try:
        vmem_limit = min(int(0.75 * pltpu.get_tpu_info().vmem_capacity_bytes),
                         96 * 1024 * 1024)
    except Exception:
        vmem_limit = 48 * 1024 * 1024

    m = N * H * W
    cost = pl.CostEstimate(
        flops=2 * m * 9 * c1 * c2p,
        transcendentals=m * c2p,
        bytes_accessed=int(slabs.size) * np.dtype(operand_dtype).itemsize
                       + int(w_fused.size) * 4 + 2 * c2p * 4 + m * c2p * 4)

    out_t = pl.pallas_call(
        _mixconv_kernel,
        out_shape=jax.ShapeDtypeStruct((N, c2p, H * W), jnp.float32),
        grid=(N, n_h),
        in_specs=[
            pl.BlockSpec((1, 1, tile_h + 2, W + 2, c1),
                         lambda n, t: (n, t, 0, 0, 0)),
            pl.BlockSpec((3, 3, c1, c2p), lambda n, t: (0, 0, 0, 0)),
            pl.BlockSpec((1, c2p), lambda n, t: (0, 0)),
            pl.BlockSpec((1, c2p), lambda n, t: (0, 0)),
        ],
        out_specs=pl.BlockSpec((1, c2p, tile_h * W), lambda n, t: (n, 0, t)),
        compiler_params=pltpu.CompilerParams(
            dimension_semantics=("parallel", "parallel"),
            vmem_limit_bytes=vmem_limit),
        cost_estimate=cost,
    )(slabs, w_fused, scale, shift)

    # (N, c2p, H*W) -> drop padded channels -> NCHW.
    return out_t[:, :c2, :].reshape(N, c2, H, W)


# ------------------------------ reference ---------------------------------- #
def _reference_forward(x_nchw, w1_g, w3_g, groups,
                       bn_gamma, bn_beta, bn_mean, bn_var, eps=1e-5):
    def conv(x, w, k, g):
        return jax.lax.conv_general_dilated(
            x, w, window_strides=(1, 1), padding=[(k // 2, k // 2)] * 2,
            dimension_numbers=("NCHW", "OIHW", "NCHW"), feature_group_count=g)

    y = jnp.concatenate([conv(x_nchw, w1_g, 1, groups[0]),
                         conv(x_nchw, w3_g, 3, groups[1])], axis=1)
    s = (bn_gamma / jnp.sqrt(bn_var + eps))[None, :, None, None]
    z = (y - bn_mean[None, :, None, None]) * s + bn_beta[None, :, None, None]
    return z * jax.nn.sigmoid(z)


# --------------------------------- main ------------------------------------ #
if __name__ == "__main__":
    # Module config: MixConv2d(c1=4, c2=6, k=(1, 3), s=1, equal_ch=True)
    c1, c2 = 4, 6
    k = (1, 3)
    nb = len(k)

    # equal_ch channel split (replicates torch.linspace/floor logic).
    i = np.floor(np.linspace(0, nb - 1e-6, c2))
    c_ = [int((i == g).sum()) for g in range(nb)]          # -> [3, 3]
    groups = [math.gcd(c1, cg) for cg in c_]               # -> [1, 1]

    key = jax.random.PRNGKey(0)
    k_x, k_w1, k_w3, k_g, k_b, k_m, k_v = jax.random.split(key, 7)

    N, H, W = 2, 16, 16
    x = jax.random.normal(k_x, (N, c1, H, W), dtype=jnp.float32)

    # Conv weights (PyTorch grouped layout: (c_out, c1//groups, kh, kw), bias=False).
    w1 = 0.1 * jax.random.normal(k_w1, (c_[0], c1 // groups[0], 1, 1), jnp.float32)
    w3 = 0.1 * jax.random.normal(k_w3, (c_[1], c1 // groups[1], 3, 3), jnp.float32)

    # BatchNorm2d(c2) eval-mode parameters / statistics.
    bn_gamma = 0.5 + jax.random.uniform(k_g, (c2,), jnp.float32)
    bn_beta = 0.1 * jax.random.normal(k_b, (c2,), jnp.float32)
    bn_mean = 0.1 * jax.random.normal(k_m, (c2,), jnp.float32)
    bn_var = 0.5 + jax.random.uniform(k_v, (c2,), jnp.float32)

    ref = jax.block_until_ready(_reference_forward(
        x, w1, w3, groups, bn_gamma, bn_beta, bn_mean, bn_var))

    # f32 operands: tight numerical check; tile_h=8 exercises the spatial-tiling
    # (grid=(N, 2)) and pipelining path at these toy sizes.
    out_f32 = jax.block_until_ready(mixconv2d_forward(
        x, w1, w3, groups, bn_gamma, bn_beta, bn_mean, bn_var,
        tile_h=8, operand_dtype=jnp.float32))
    assert out_f32.shape == (N, c2, H, W), out_f32.shape
    assert np.allclose(np.asarray(out_f32), np.asarray(ref),
                       atol=1e-4, rtol=1e-4), "f32 mismatch vs reference"

    # bf16 operands in HBM (recommended config: halves the dominant HBM traffic;
    # accumulation / BN / SiLU remain f32 in-kernel).
    out_bf16 = jax.block_until_ready(mixconv2d_forward(
        x, w1, w3, groups, bn_gamma, bn_beta, bn_mean, bn_var,
        tile_h=8, operand_dtype=jnp.bfloat16))
    assert out_bf16.shape == (N, c2, H, W), out_bf16.shape
    assert np.allclose(np.asarray(out_bf16), np.asarray(ref),
                       atol=5e-2, rtol=5e-2), "bf16 mismatch vs reference"

    print("KERNEL_OK")
</pallas_src>

<mosaic_0001>
module attributes {stable_mosaic.version = 11 : i64} {
  func.func @_mixconv_kernel(%arg0: i32, %arg1: i32, %arg2: memref<1x1x10x18x4xf32, #tpu.memory_space<vmem>>, %arg3: memref<3x3x4x8xf32, #tpu.memory_space<vmem>>, %arg4: memref<1x8xf32, #tpu.memory_space<vmem>>, %arg5: memref<1x8xf32, #tpu.memory_space<vmem>>, %arg6: memref<1x8x128xf32, #tpu.memory_space<vmem>>) attributes {dimension_semantics = [#tpu.dimension_semantics<parallel>, #tpu.dimension_semantics<parallel>], iteration_bounds = array<i64: 2, 2>, scalar_prefetch = 0 : i64, scratch_operands = 0 : i64, tpu.core_type = #tpu.core_type<tc>, window_params = [{transform_indices = @transform_0, window_bounds = array<i64: 1, 1, 10, 18, 4>}, {pipeline_mode = #tpu.pipeline_mode<synchronous>, transform_indices = @transform_1, window_bounds = array<i64: 3, 3, 4, 8>}, {pipeline_mode = #tpu.pipeline_mode<synchronous>, transform_indices = @transform_2, window_bounds = array<i64: 1, 8>}, {pipeline_mode = #tpu.pipeline_mode<synchronous>, transform_indices = @transform_3, window_bounds = array<i64: 1, 8>}, {transform_indices = @transform_4, window_bounds = array<i64: 1, 8, 128>}]} {
    %c0 = arith.constant 0 : index
    %c0_0 = arith.constant 0 : index
    %c0_1 = arith.constant 0 : index
    %c0_2 = arith.constant 0 : index
    %c0_3 = arith.constant 0 : index
    %0 = vector.load %arg2[%c0, %c0_0, %c0_1, %c0_2, %c0_3] : memref<1x1x10x18x4xf32, #tpu.memory_space<vmem>>, vector<1x1x10x18x4xf32>
    %1 = vector.shape_cast %0 : vector<1x1x10x18x4xf32> to vector<10x18x4xf32>
    %c0_4 = arith.constant 0 : index
    %c0_5 = arith.constant 0 : index
    %c0_6 = arith.constant 0 : index
    %c0_7 = arith.constant 0 : index
    %2 = vector.load %arg3[%c0_4, %c0_5, %c0_6, %c0_7] : memref<3x3x4x8xf32, #tpu.memory_space<vmem>>, vector<3x3x4x8xf32>
    %cst = arith.constant 0.000000e+00 : f32
    %3 = vector.broadcast %cst : f32 to vector<128x8xf32>
    %4 = vector.extract_strided_slice %1 {offsets = [0, 0, 0], sizes = [8, 16, 4], strides = [1, 1, 1]} : vector<10x18x4xf32> to vector<8x16x4xf32>
    %5 = vector.shape_cast %4 : vector<8x16x4xf32> to vector<128x4xf32>
    %6 = vector.extract_strided_slice %2 {offsets = [0, 0, 0, 0], sizes = [1, 1, 4, 8], strides = [1, 1, 1, 1]} : vector<3x3x4x8xf32> to vector<1x1x4x8xf32>
    %7 = vector.shape_cast %6 : vector<1x1x4x8xf32> to vector<4x8xf32>
    %cst_8 = arith.constant dense<0.000000e+00> : vector<128x8xf32>
    %8 = tpu.matmul %5, %7, %cst_8 {dimension_numbers = #tpu.dot_dimension_numbers<[1], [0], [0], [1], [0, 0, 1, 1], [], []>} : vector<128x4xf32>, vector<4x8xf32>, vector<128x8xf32> -> vector<128x8xf32>
    %9 = arith.addf %3, %8 : vector<128x8xf32>
    %10 = vector.extract_strided_slice %1 {offsets = [0, 1, 0], sizes = [8, 16, 4], strides = [1, 1, 1]} : vector<10x18x4xf32> to vector<8x16x4xf32>
    %11 = vector.shape_cast %10 : vector<8x16x4xf32> to vector<128x4xf32>
    %12 = vector.extract_strided_slice %2 {offsets = [0, 1, 0, 0], sizes = [1, 1, 4, 8], strides = [1, 1, 1, 1]} : vector<3x3x4x8xf32> to vector<1x1x4x8xf32>
    %13 = vector.shape_cast %12 : vector<1x1x4x8xf32> to vector<4x8xf32>
    %cst_9 = arith.constant dense<0.000000e+00> : vector<128x8xf32>
    %14 = tpu.matmul %11, %13, %cst_9 {dimension_numbers = #tpu.dot_dimension_numbers<[1], [0], [0], [1], [0, 0, 1, 1], [], []>} : vector<128x4xf32>, vector<4x8xf32>, vector<128x8xf32> -> vector<128x8xf32>
    %15 = arith.addf %9, %14 : vector<128x8xf32>
    %16 = vector.extract_strided_slice %1 {offsets = [0, 2, 0], sizes = [8, 16, 4], strides = [1, 1, 1]} : vector<10x18x4xf32> to vector<8x16x4xf32>
    %17 = vector.shape_cast %16 : vector<8x16x4xf32> to vector<128x4xf32>
    %18 = vector.extract_strided_slice %2 {offsets = [0, 2, 0, 0], sizes = [1, 1, 4, 8], strides = [1, 1, 1, 1]} : vector<3x3x4x8xf32> to vector<1x1x4x8xf32>
    %19 = vector.shape_cast %18 : vector<1x1x4x8xf32> to vector<4x8xf32>
    %cst_10 = arith.constant dense<0.000000e+00> : vector<128x8xf32>
    %20 = tpu.matmul %17, %19, %cst_10 {dimension_numbers = #tpu.dot_dimension_numbers<[1], [0], [0], [1], [0, 0, 1, 1], [], []>} : vector<128x4xf32>, vector<4x8xf32>, vector<128x8xf32> -> vector<128x8xf32>
    %21 = arith.addf %15, %20 : vector<128x8xf32>
    %22 = vector.extract_strided_slice %1 {offsets = [1, 0, 0], sizes = [8, 16, 4], strides = [1, 1, 1]} : vector<10x18x4xf32> to vector<8x16x4xf32>
    %23 = vector.shape_cast %22 : vector<8x16x4xf32> to vector<128x4xf32>
    %24 = vector.extract_strided_slice %2 {offsets = [1, 0, 0, 0], sizes = [1, 1, 4, 8], strides = [1, 1, 1, 1]} : vector<3x3x4x8xf32> to vector<1x1x4x8xf32>
    %25 = vector.shape_cast %24 : vector<1x1x4x8xf32> to vector<4x8xf32>
    %cst_11 = arith.constant dense<0.000000e+00> : vector<128x8xf32>
    %26 = tpu.matmul %23, %25, %cst_11 {dimension_numbers = #tpu.dot_dimension_numbers<[1], [0], [0], [1], [0, 0, 1, 1], [], []>} : vector<128x4xf32>, vector<4x8xf32>, vector<128x8xf32> -> vector<128x8xf32>
    %27 = arith.addf %21, %26 : vector<128x8xf32>
    %28 = vector.extract_strided_slice %1 {offsets = [1, 1, 0], sizes = [8, 16, 4], strides = [1, 1, 1]} : vector<10x18x4xf32> to vector<8x16x4xf32>
    %29 = vector.shape_cast %28 : vector<8x16x4xf32> to vector<128x4xf32>
    %30 = vector.extract_strided_slice %2 {offsets = [1, 1, 0, 0], sizes = [1, 1, 4, 8], strides = [1, 1, 1, 1]} : vector<3x3x4x8xf32> to vector<1x1x4x8xf32>
    %31 = vector.shape_cast %30 : vector<1x1x4x8xf32> to vector<4x8xf32>
    %cst_12 = arith.constant dense<0.000000e+00> : vector<128x8xf32>
    %32 = tpu.matmul %29, %31, %cst_12 {dimension_numbers = #tpu.dot_dimension_numbers<[1], [0], [0], [1], [0, 0, 1, 1], [], []>} : vector<128x4xf32>, vector<4x8xf32>, vector<128x8xf32> -> vector<128x8xf32>
    %33 = arith.addf %27, %32 : vector<128x8xf32>
    %34 = vector.extract_strided_slice %1 {offsets = [1, 2, 0], sizes = [8, 16, 4], strides = [1, 1, 1]} : vector<10x18x4xf32> to vector<8x16x4xf32>
    %35 = vector.shape_cast %34 : vector<8x16x4xf32> to vector<128x4xf32>
    %36 = vector.extract_strided_slice %2 {offsets = [1, 2, 0, 0], sizes = [1, 1, 4, 8], strides = [1, 1, 1, 1]} : vector<3x3x4x8xf32> to vector<1x1x4x8xf32>
    %37 = vector.shape_cast %36 : vector<1x1x4x8xf32> to vector<4x8xf32>
    %cst_13 = arith.constant dense<0.000000e+00> : vector<128x8xf32>
    %38 = tpu.matmul %35, %37, %cst_13 {dimension_numbers = #tpu.dot_dimension_numbers<[1], [0], [0], [1], [0, 0, 1, 1], [], []>} : vector<128x4xf32>, vector<4x8xf32>, vector<128x8xf32> -> vector<128x8xf32>
    %39 = arith.addf %33, %38 : vector<128x8xf32>
    %40 = vector.extract_strided_slice %1 {offsets = [2, 0, 0], sizes = [8, 16, 4], strides = [1, 1, 1]} : vector<10x18x4xf32> to vector<8x16x4xf32>
    %41 = vector.shape_cast %40 : vector<8x16x4xf32> to vector<128x4xf32>
    %42 = vector.extract_strided_slice %2 {offsets = [2, 0, 0, 0], sizes = [1, 1, 4, 8], strides = [1, 1, 1, 1]} : vector<3x3x4x8xf32> to vector<1x1x4x8xf32>
    %43 = vector.shape_cast %42 : vector<1x1x4x8xf32> to vector<4x8xf32>
    %cst_14 = arith.constant dense<0.000000e+00> : vector<128x8xf32>
    %44 = tpu.matmul %41, %43, %cst_14 {dimension_numbers = #tpu.dot_dimension_numbers<[1], [0], [0], [1], [0, 0, 1, 1], [], []>} : vector<128x4xf32>, vector<4x8xf32>, vector<128x8xf32> -> vector<128x8xf32>
    %45 = arith.addf %39, %44 : vector<128x8xf32>
    %46 = vector.extract_strided_slice %1 {offsets = [2, 1, 0], sizes = [8, 16, 4], strides = [1, 1, 1]} : vector<10x18x4xf32> to vector<8x16x4xf32>
    %47 = vector.shape_cast %46 : vector<8x16x4xf32> to vector<128x4xf32>
    %48 = vector.extract_strided_slice %2 {offsets = [2, 1, 0, 0], sizes = [1, 1, 4, 8], strides = [1, 1, 1, 1]} : vector<3x3x4x8xf32> to vector<1x1x4x8xf32>
    %49 = vector.shape_cast %48 : vector<1x1x4x8xf32> to vector<4x8xf32>
    %cst_15 = arith.constant dense<0.000000e+00> : vector<128x8xf32>
    %50 = tpu.matmul %47, %49, %cst_15 {dimension_numbers = #tpu.dot_dimension_numbers<[1], [0], [0], [1], [0, 0, 1, 1], [], []>} : vector<128x4xf32>, vector<4x8xf32>, vector<128x8xf32> -> vector<128x8xf32>
    %51 = arith.addf %45, %50 : vector<128x8xf32>
    %52 = vector.extract_strided_slice %1 {offsets = [2, 2, 0], sizes = [8, 16, 4], strides = [1, 1, 1]} : vector<10x18x4xf32> to vector<8x16x4xf32>
    %53 = vector.shape_cast %52 : vector<8x16x4xf32> to vector<128x4xf32>
    %54 = vector.extract_strided_slice %2 {offsets = [2, 2, 0, 0], sizes = [1, 1, 4, 8], strides = [1, 1, 1, 1]} : vector<3x3x4x8xf32> to vector<1x1x4x8xf32>
    %55 = vector.shape_cast %54 : vector<1x1x4x8xf32> to vector<4x8xf32>
    %cst_16 = arith.constant dense<0.000000e+00> : vector<128x8xf32>
    %56 = tpu.matmul %53, %55, %cst_16 {dimension_numbers = #tpu.dot_dimension_numbers<[1], [0], [0], [1], [0, 0, 1, 1], [], []>} : vector<128x4xf32>, vector<4x8xf32>, vector<128x8xf32> -> vector<128x8xf32>
    %57 = arith.addf %51, %56 : vector<128x8xf32>
    %c0_17 = arith.constant 0 : index
    %c0_18 = arith.constant 0 : index
    %58 = vector.load %arg4[%c0_17, %c0_18] : memref<1x8xf32, #tpu.memory_space<vmem>>, vector<1x8xf32>
    %59 = vector.broadcast %58 : vector<1x8xf32> to vector<128x8xf32>
    %60 = arith.mulf %57, %59 : vector<128x8xf32>
    %c0_19 = arith.constant 0 : index
    %c0_20 = arith.constant 0 : index
    %61 = vector.load %arg5[%c0_19, %c0_20] : memref<1x8xf32, #tpu.memory_space<vmem>>, vector<1x8xf32>
    %62 = vector.broadcast %61 : vector<1x8xf32> to vector<128x8xf32>
    %63 = arith.addf %60, %62 : vector<128x8xf32>
    %64 = arith.negf %63 : vector<128x8xf32>
    %65 = math.exp %64 : vector<128x8xf32>
    %cst_21 = arith.constant 1.000000e+00 : f32
    %66 = vector.broadcast %cst_21 : f32 to vector<128x8xf32>
    %67 = arith.addf %66, %65 : vector<128x8xf32>
    %68 = arith.divf %66, %67 : vector<128x8xf32>
    %69 = arith.mulf %63, %68 : vector<128x8xf32>
    %70 = tpu.transpose %69, [1, 0] : vector<128x8xf32> -> vector<8x128xf32>
    %c0_22 = arith.constant 0 : index
    %c0_23 = arith.constant 0 : index
    %c0_24 = arith.constant 0 : index
    %71 = vector.load %arg6[%c0_22, %c0_23, %c0_24] : memref<1x8x128xf32, #tpu.memory_space<vmem>>, vector<1x8x128xf32>
    %72 = vector.shape_cast %71 : vector<1x8x128xf32> to vector<8x128xf32>
    %73 = vector.shape_cast %70 : vector<8x128xf32> to vector<1x8x128xf32>
    tpu.vector_store %arg6[%c0_22, %c0_23, %c0_24], %73 {strides = array<i32>} : memref<1x8x128xf32, #tpu.memory_space<vmem>>, vector<1x8x128xf32>,
    return
  }
  func.func @transform_0(%arg0: i32, %arg1: i32) -> (i32, i32, i32, i32, i32) {
    %c0_i32 = arith.constant 0 : i32
    %c0_i32_0 = arith.constant 0 : i32
    %c0_i32_1 = arith.constant 0 : i32
    %c0_i32_2 = arith.constant 0 : i32
    return %arg0, %arg1, %c0_i32, %c0_i32_0, %c0_i32_1 : i32, i32, i32, i32, i32
  }
  func.func @transform_1(%arg0: i32, %arg1: i32) -> (i32, i32, i32, i32) {
    %c0_i32 = arith.constant 0 : i32
    %c0_i32_0 = arith.constant 0 : i32
    %c0_i32_1 = arith.constant 0 : i32
    %c0_i32_2 = arith.constant 0 : i32
    %c0_i32_3 = arith.constant 0 : i32
    return %c0_i32, %c0_i32_0, %c0_i32_1, %c0_i32_2 : i32, i32, i32, i32
  }
  func.func @transform_2(%arg0: i32, %arg1: i32) -> (i32, i32) {
    %c0_i32 = arith.constant 0 : i32
    %c0_i32_0 = arith.constant 0 : i32
    %c0_i32_1 = arith.constant 0 : i32
    return %c0_i32, %c0_i32_0 : i32, i32
  }
  func.func @transform_3(%arg0: i32, %arg1: i32) -> (i32, i32) {
    %c0_i32 = arith.constant 0 : i32
    %c0_i32_0 = arith.constant 0 : i32
    %c0_i32_1 = arith.constant 0 : i32
    return %c0_i32, %c0_i32_0 : i32, i32
  }
  func.func @transform_4(%arg0: i32, %arg1: i32) -> (i32, i32, i32) {
    %c0_i32 = arith.constant 0 : i32
    %c0_i32_0 = arith.constant 0 : i32
    return %arg0, %c0_i32, %arg1 : i32, i32, i32
  }
}

</mosaic_0001>

<bundles_post_ra>
// kernel: tpu_custom_call.1
= control target key start
LH: loop header
LB: loop body
LE: loop exit
PB: predicated region body
PF: predicated region fallthrough
CT: control target
= control target key end

     0   :  { %9 = vsyncpa [#allocation3], 0  ;;  %s4032_s0 = inlined_call_operand.vmem [shape: f32[2,2,10,18,4], index: 0, kind: input, shape index: {}]   ;;  %s4033_s1 = inlined_call_operand.vmem [shape: f32[3,3,4,8], index: 1, kind: input, shape index: {}]   ;;  %s4034_s2 = inlined_call_operand.vmem [shape: f32[1,8], index: 2, kind: input, shape index: {}]   ;;  %s4035_s3 = inlined_call_operand.vmem [shape: f32[1,8], index: 3, kind: input, shape index: {}]   ;;  %s4036_s4 = inlined_call_operand.hbm [shape: f32[2,8,256], index: 4, kind: output, shape index: {}]  }
   0x1   :  { %11 = vsyncpa [#allocation3 + $0x1], 0  ;;  %s3208_s15 = smov 0   ;;  %s3210_s16 = smov 0  }
   0x2   :  { %s3212_s17 = smov 0   ;;  %s3214_s18 = smov 0  }
   0x3   :  { %s3216_s19 = smov 0   ;;  %s3218_s20 = smov 0  }
   0x4   :  { %s3220_s21 = smov 0   ;;  %s3222_s22 = smov 0  }
   0x5 LB: > { %s2249_s23 = sadd.s32 4294967295, %s3180_s22   ;;  %s2250_s24 = sadd.s32 4294967294, %s3180_s22   ;;  %s3180_s22 = sphi %s3222_s22, %s17_s22   ;;  %s3176_s21 = sphi %s3220_s21, %s4045_s21   ;;  %s3172_s20 = sphi %s3218_s20, %s4044_s20   ;;  %s3168_s19 = sphi %s3216_s19, %s4043_s19   ;;  %s3164_s18 = sphi %s3214_s18, %s4042_s18   ;;  %s3160_s17 = sphi %s3212_s17, %s4041_s17   ;;  %s3156_s16 = sphi %s3210_s16, %s4040_s16   ;;  %s3152_s15 = sphi %s3208_s15, %s4039_s15  }
   0x6   : > { %s26_s25 = sadd.s32 1, %s3172_s20  ;;  %s29_s26 = sadd.s32 1, %s3176_s21 }
   0x7   : > { %p27_p0 = scmp.ge.s32.totalorder %s26_s25, 2  ;;  %p139_p1 = scmp.ne.s32.totalorder %s3160_s17, %s3156_s16 }
   0x8   : > { %p140_p2 = scmp.eq.s32.totalorder %s2249_s23, 3  ;;  %p145_p5 = scmp.ne.s32.totalorder %s3156_s16, %s3152_s15 }
   0x9   : > { %s4047_s25 = smov (%p27_p0, %s26_s25), 0  ;;  %s4049_s26 = smov (!%p27_p0, %s29_s26), %s3176_s21 }
   0xa   : > { %s125_s27 = ssub.s32 %s3172_s20, %s4047_s25  ;;  %p3259_p3 = por %p140_p2, %p139_p1 }
   0xb   : > { %p31_p4 = scmp.ge.s32.totalorder %s4049_s26, 2  ;;  %p146_p6 = scmp.eq.s32.totalorder %s2250_s24, 3 }
   0xc   : > { %p2253_p7 = scmp.ge.s32.totalorder %s3180_s22, 1  ;;  %p185_p9 = scmp.lt.s32.totalorder %s3180_s22, 5 }
   0xd   : > { %s4051_s26 = smov (%p31_p4, %s4049_s26), 0  ;;  %p3268_p8 = por %p146_p6, %p145_p5 }
   0xe   : > { %s124_s30 = ssub.s32 %s3176_s21, %s4051_s26  ;;  %s129_s5 = sadd.s32 1, %s3160_s17 }
   0xf   : > { %s126_s6 = sor.u32 %s125_s27, %s124_s30  ;;  %p186_p10 = pnand %p2253_p7, %p185_p9 }
  0x10   : > { %p127_p11 = scmp.eq.s32.totalorder %s126_s6, 0  ;;  %v3282_v0 = vld [vmem:[%s4033_s1 + $0x10] sm:$0xf] (!%p186_p10)  ;;  %vm361_vm0 = vcmask (!%p186_p10), 1043456   ;;  %v255_v1 = vld [vmem:[%s4033_s1 + $0x4] sm:$0xf] (!%p186_p10) }
  0x11   : > { %189 = sbr.rel (%p186_p10) target bundleno = 540 (0x21c), region = 36  ;;  %p215_p12 = scmp.lt.s32.totalorder (!%p186_p10), %s3168_s19, 1  ;;  %2689 = vmatprep.subr.msk.mxu0 (!%p186_p10), %vm361_vm0, %v3282_v0  ;;  %2585 = vmatprep.subr.msk.mxu1 (!%p186_p10), %vm361_vm0, %v255_v1  ;;  %v259_v2 = vld [vmem:[%s4033_s1 + $0x14] sm:$0xf] (!%p186_p10)  ;;  %v254_v3 = vld [vmem:[%s4033_s1] sm:$0xf] (!%p186_p10) }
  0x12   : > { %s3277_s7 = scalar_select %p127_p11, %s3160_s17, %s129_s5  }
  0x13   : > { %p217_p13 = scmp.lt.s32.totalorder (!%p186_p10), %s3164_s18, 1  ;;  %2690 = vmatpush3.msk.msra.mxu0 (!%p186_p10), %vm361_vm0, %v3282_v0  ;;  %2586 = vmatpush3.msk.msra.mxu1 (!%p186_p10), %vm361_vm0, %v255_v1  ;;  %vm287_vm1 = vcmask (!%p186_p10), 1046528   ;;  %vm328_vm2 = vcmask (!%p186_p10), 31744   ;;  %v3373_v33 = vld [vmem:[%s4033_s1 + $0x18] sm:$0xf] (!%p186_p10)  ;;  %vm690_vm3 = vcmask (!%p186_p10), 1045504  }
  0x14   : > { %2715 = vmatprep.subr.msk.mxu0 (!%p186_p10), %vm361_vm0, %v259_v2  ;;  %2611 = vmatprep.subr.msk.mxu1 (!%p186_p10), %vm361_vm0, %v254_v3  ;;  %v3383_v35 = vld [vmem:[%s4033_s1 + $0x8] sm:$0xf] (!%p186_p10)  ;;  %s212_s13 = sand.u32 (!%p186_p10), 1, %s3156_s16   ;;  %s2428_s23 = sshll.u32 (!%p186_p10), %s3168_s19, 1 }
  0x15   : > { %s2164_s24 = sadd.s32 (!%p186_p10), %s3164_s18, %s2428_s23  ;;  %s2153_s10 = scalar_lea.sflag (!%p186_p10), [#allocation3], %s212_s13 }
  0x18   : > { %s216_s14 = scalar_select %p215_p12, %s3168_s19, 1 }
  0x19   : > { %s218_s27 = scalar_select %p217_p13, %s3164_s18, 1 }
  0x1a   : > { %s2950_s30 = smul.u32 60, %s216_s14  ;;  %s2254_s14 = sshll.u32 %s212_s13, 3 }
  0x1b   : > { %s2949_s5 = smul.u32 30, %s218_s27  ;;  %s214_s27 = scalar_lea.vmem [#allocation2], %s2254_s14 }
  0x1c   : > { %s3182_s18 = smov [#allocation2]  }
  0x1d   : > { %s221_s6 = sadd.s32 %s2950_s30, %s2949_s5  ;;  %s2168_s30 = sshll.u32 %s214_s27, 4  ;;  %s3976_s30 = int_to_ptr.vmem [resolvable:$true] %s2168_s30 }
  0x1e   : > { %s2255_s8 = sshll.u32 %s221_s6, 3  ;;  %s2429_s5 = sshll.u32 %s2164_s24, 7 }
  0x1f   : > { %s3308_s11 = scalar_lea.vmem %s4032_s0, %s2255_s8  ;;  %s3981_s9 = scalar_lea.hbm %s4036_s4, %s2429_s5 }
  0x20   : > { %v3311_v4 = vld [vmem:[%s3308_s11] sm:$0xff]  ;;  %v3314_v5 = vld [vmem:[%s3308_s11 + $0x8] sm:$0xff]  ;;  %v3317_v6 = vld [vmem:[%s3308_s11 + $0x18] sm:$0xff]  ;;  %s3090_s19 = sshll.u32 %s3182_s18, 4  ;;  %s3091_s19 = int_to_ptr.vmem [resolvable:$false] %s3090_s19 }
  0x21   : > { %v288_v7 = vrot.slane %v3311_v4, 1  ;;  %v289_v8 = vrot.slane %v3314_v5, 1  ;;  %v3322_v9 = vld [vmem:[%s3308_s11 + $0x20] sm:$0xff]  ;;  %v293_v10 = vrot.slane %v3317_v6, 1  ;;  %v3326_v11 = vld [vmem:[%s3308_s11 + $0x10] sm:$0x3]  ;;  %p3093_p4 = scmp.lt.s32.totalorder %s3976_s30, %s3091_s19 }
  0x22   : > { %v294_v12 = vrot.slane %v3322_v9, 1  ;;  %v291_v13 = vrot.slane %v3326_v11, 1  ;;  %v3331_v14 = vld [vmem:[%s3308_s11 + $0x28] sm:$0x3]  ;;  %v3334_v15 = vld [vmem:[%s3308_s11 + $0x30] sm:$0xff]  ;;  %v3339_v18 = vld [vmem:[%s3308_s11 + $0x38] sm:$0xff] }
  0x23   : > { %v290_v16 = vsel %vm287_vm1, %v288_v7, %v289_v8  ;;  %v296_v17 = vrot.slane %v3331_v14, 1  ;;  %v298_v19 = vrot.slane %v3334_v15, 1  ;;  %v3343_v20 = vld [vmem:[%s3308_s11 + $0x40] sm:$0x3]  ;;  %v299_v23 = vrot.slane %v3339_v18, 1  ;;  %v3351_v25 = vld [vmem:[%s3308_s11 + $0x48] sm:$0xff] }
  0x24   : > { %2587 = vmatprep.mubr.msk.f32.mxu1 %vm328_vm2, %v290_v16  ;;  %v295_v21 = vsel %vm287_vm1, %v293_v10, %v294_v12  ;;  %v292_v22 = vsel %vm287_vm1, %v289_v8, %v291_v13  ;;  %v301_v24 = vrot.slane %v3343_v20, 1  ;;  %v3354_v26 = vld [vmem:[%s3308_s11 + $0x50] sm:$0xff]  ;;  %v3357_v27 = vld [vmem:[%s3308_s11 + $0x58] sm:$0x3]  ;;  %v303_v29 = vrot.slane %v3351_v25, 1  ;;  %v3365_v31 = vld [vmem:[%s3308_s11 + $0x60] sm:$0xff] }
  0x25   : > { %2691 = vmatprep.mubr.msk.f32.mxu0 %vm328_vm2, %v295_v21  ;;  %2588 = vmatmul.mubr.msk.f32.vlgmr.msra.gmra.mrb[0].mxu1 %vm328_vm2, %v292_v22  ;;  %v297_v28 = vsel %vm287_vm1, %v294_v12, %v296_v17  ;;  %v304_v30 = vrot.slane %v3354_v26, 1  ;;  %v3368_v32 = vld [vmem:[%s3308_s11 + $0x68] sm:$0xff]  ;;  %v3378_v34 = vsel %vm287_vm1, %v298_v19, %v299_v23  ;;  %v306_v37 = vrot.slane %v3357_v27, 1  ;;  %v3398_v41 = vld [vmem:[%s3308_s11 + $0x70] sm:$0x3]  ;;  %v3422_v47 = vld [vmem:[%s3308_s11 + $0x78] sm:$0xff] }
  0x26   : > { %2692 = vmatmul.mubr.msk.f32.vlgmr.msra.gmra.mrb[0].mxu0 %vm328_vm2, %v297_v28  ;;  %2590 = vmatprep.mubr.msk.f32.mxu1 %vm328_vm2, %v295_v21  ;;  %v3389_v36 = vsel %vm287_vm1, %v299_v23, %v301_v24  ;;  %v308_v39 = vrot.slane %v3365_v31, 1  ;;  %v309_v40 = vrot.slane %v3368_v32, 1  ;;  %v311_v43 = vrot.slane %v3398_v41, 1  ;;  %v3425_v48 = vld [vmem:[%s3308_s11 + $0x80] sm:$0xff]  ;;  %v3434_v49 = vld [vmem:[%s3308_s11 + $0x88] sm:$0x3] }
  0x27   : > { %2716 = vmatpush3.msk.msra.mxu0 %vm361_vm0, %v259_v2  ;;  %2694 = vmatprep.mubr.msk.f32.mxu0 %vm328_vm2, %v3378_v34  ;;  %v3393_v38 = vsel %vm287_vm1, %v303_v29, %v304_v30  ;;  %v3413_v42 = vsel %vm287_vm1, %v304_v30, %v306_v37  ;;  %v696_v45 = vrot.slane %v3317_v6, 2  ;;  %v697_v46 = vrot.slane %v3322_v9, 2  ;;  %v3445_v54 = vld [vmem:[%s3308_s11 + $0x90] sm:$0xff]  ;;  %v3448_v55 = vld [vmem:[%s3308_s11 + $0x98] sm:$0xff]  ;;  %v3466_v63 = vld [vmem:[%s3308_s11 + $0xa0] sm:$0x3] }
  0x28   : > { %2741 = vmatprep.subr.msk.mxu0 %vm361_vm0, %v3373_v33  ;;  %2612 = vmatpush3.msk.msra.mxu1 %vm361_vm0, %v254_v3  ;;  %v3417_v44 = vsel %vm287_vm1, %v308_v39, %v309_v40  ;;  %v699_v50 = vrot.slane %v3331_v14, 2  ;;  %v3440_v51 = vsel %vm287_vm1, %v309_v40, %v311_v43  ;;  %v313_v52 = vrot.slane %v3422_v47, 1  ;;  %v3481_v8 = vld [vmem:[%s4033_s1 + $0x1c] sm:$0xf]  ;;  %v3487_v12 = vld [vmem:[%s3308_s11 + $0xa8] sm:$0xff]  ;;  %v3490_v13 = vld [vmem:[%s3308_s11 + $0xb0] sm:$0xff] }
  0x29   : > { %2591 = vmatmul.mubr.msk.f32.gmra.mrb[2].mxu1 %vm328_vm2, %v297_v28  ;;  %2637 = vmatprep.subr.msk.mxu1 %vm361_vm0, %v3383_v35  ;;  %v314_v53 = vrot.slane %v3425_v48, 1  ;;  %v3451_v56 = vsel %vm690_vm3, %v696_v45, %v697_v46  ;;  %v701_v57 = vrot.slane %v3334_v15, 2  ;;  %v702_v58 = vrot.slane %v3339_v18, 2  ;;  %v3493_v14 = vld [vmem:[%s3308_s11 + $0xd8] sm:$0xff]  ;;  %v3506_v21 = vld [vmem:[%s3308_s11 + $0xe0] sm:$0xff]  ;;  %s3092_s12 = scalar_lea.vmem %s3091_s19, 256 }
  0x2a   : > { %2695 = vmatmul.mubr.msk.f32.gmra.mrb[2].mxu0 %vm328_vm2, %v3389_v36  ;;  %2593 = vmatprep.mubr.msk.f32.mxu1 %vm328_vm2, %v3378_v34  ;;  %v316_v59 = vrot.slane %v3434_v49, 1  ;;  %v704_v60 = vrot.slane %v3343_v20, 2  ;;  %v318_v61 = vrot.slane %v3445_v54, 1  ;;  %v319_v62 = vrot.slane %v3448_v55, 1  ;;  %v253_v22 = vld [vmem:[%s3308_s11 + $0xe8] sm:$0x3] }
  0x2b   : > { %2697 = vmatprep.mubr.msk.f32.mxu0 %vm328_vm2, %v3393_v38  ;;  %v3471_v1 = vsel %vm690_vm3, %v697_v46, %v699_v50  ;;  %v3474_v2 = vsel %vm287_vm1, %v313_v52, %v314_v53  ;;  %v706_v3 = vrot.slane %v3351_v25, 2  ;;  %v707_v7 = vrot.slane %v3354_v26, 2  ;;  %v3529_v40 = vld [vmem:[%s3308_s11 + $0xb8] sm:$0x3] }
  0x2c   : > { %v3484_v10 = vsel %vm690_vm3, %v701_v57, %v702_v58  ;;  %v3498_v16 = vsel %vm287_vm1, %v314_v53, %v316_v59  ;;  %v3501_v17 = vsel %vm690_vm3, %v702_v58, %v704_v60  ;;  %v321_v19 = vrot.slane %v3466_v63, 1 }
  0x2d   : > { %2594 = vmatmul.mubr.msk.f32.gmra.mrb[4].mxu1 %vm328_vm2, %v3389_v36  ;;  %v1615_v20 = vrot.slane %v3493_v14, 1  ;;  %v3514_v23 = vsel %vm287_vm1, %v318_v61, %v319_v62  ;;  %v709_v24 = vrot.slane %v3357_v27, 2  ;;  %v1788_v28 = vrot.slane %v3493_v14, 2 }
  0x2e   : > { %2698 = vmatmul.mubr.msk.f32.gmra.mrb[4].mxu0 %vm328_vm2, %v3413_v42  ;;  %2596 = vmatprep.mubr.msk.f32.mxu1 %vm328_vm2, %v3393_v38  ;;  %v1616_v29 = vrot.slane %v3506_v21, 1  ;;  %v3524_v30 = vsel %vm690_vm3, %v706_v3, %v707_v7  ;;  %v323_v37 = vrot.slane %v3487_v12, 1  ;;  %v324_v39 = vrot.slane %v3490_v13, 1 }
  0x2f   : > { %2700 = vmatprep.mubr.msk.f32.mxu0 %vm328_vm2, %v3417_v44  ;;  %v1789_v27 = vrot.slane %v3506_v21, 2  ;;  %v711_v43 = vrot.slane %v3365_v31, 2  ;;  %v712_v45 = vrot.slane %v3368_v32, 2  ;;  %v1618_v46 = vrot.slane %v253_v22, 1 }
  0x30   : > { %v1791_v52 = vrot.slane %v253_v22, 2  ;;  %v3549_v53 = vsel %vm287_vm1, %v319_v62, %v321_v19  ;;  %v326_v57 = vrot.slane %v3529_v40, 1  ;;  %v3558_v59 = vsel %vm690_vm3, %v707_v7, %v709_v24 }
  0x31   : > { %2597 = vmatmul.mubr.msk.f32.gmra.mrb[6].mxu1 %vm328_vm2, %v3413_v42  ;;  %v3542_v50 = vsel %vm690_vm3, %v1788_v28, %v1789_v27  ;;  %v3553_v58 = vsel %vm287_vm1, %v1616_v29, %v1618_v46  ;;  %v3561_v60 = vsel %vm287_vm1, %v323_v37, %v324_v39  ;;  %v714_v61 = vrot.slane %v3398_v41, 2  ;;  %v3615_v46 = vld [vmem:[%s3308_s11 + $0xc8] sm:$0xff] }
  0x32   : > { %2701 = vmatmul.mubr.msk.f32.gmra.mrb[6].mxu0 %vm328_vm2, %v3440_v51  ;;  %2599 = vmatprep.mubr.msk.f32.mxu1 %vm328_vm2, %v3417_v44  ;;  %v3565_v3 = vsel %vm690_vm3, %v1789_v27, %v1791_v52  ;;  %v3568_v62 = vsel %vm690_vm3, %v711_v43, %v712_v45  ;;  %v716_v19 = vrot.slane %v3422_v47, 2  ;;  %v3579_v41 = vsel %vm287_vm1, %v324_v39, %v326_v57  ;;  %v257_v52 = vld [vmem:[%s4033_s1 + $0xc] sm:$0xf] }
  0x33   : > { %2717 = vmatprep.mubr.msk.f32.mxu0 %vm328_vm2, %v3451_v56  ;;  %v3584_v7 = vsel %vm690_vm3, %v712_v45, %v714_v61  ;;  %v719_v22 = vrot.slane %v3434_v49, 2  ;;  %v721_v28 = vrot.slane %v3445_v54, 2  ;;  %v724_v37 = vrot.slane %v3466_v63, 2  ;;  %v3612_v45 = vld [vmem:[%s3308_s11 + $0xc0] sm:$0xff] }
  0x34   : > { %v726_v27 = vrot.slane %v3487_v12, 2  ;;  %v727_v43 = vrot.slane %v3490_v13, 2  ;;  %v729_v57 = vrot.slane %v3529_v40, 2 }
  0x35   : > { %2600 = vmatmul.mubr.msk.f32.gmra.mrb[8].mxu1 %vm328_vm2, %v3440_v51 }
  0x36   : > { %2718 = vmatmul.mubr.msk.f32.vlgmr.msra.gmra.mrb[0].mxu0 %vm328_vm2, %v3471_v1  ;;  %2602 = vmatprep.mubr.msk.f32.mxu1 %vm328_vm2, %v3474_v2  ;;  %v3633_v61 = vsel %vm690_vm3, %v726_v27, %v727_v43  ;;  %v691_v27 = vrot.slane %v3311_v4, 2 }
  0x37   : > { %2742 = vmatpush3.msk.msra.mxu0 %vm361_vm0, %v3373_v33  ;;  %2720 = vmatprep.mubr.msk.f32.mxu0 %vm328_vm2, %v3484_v10  ;;  %v3537_v33 = vsel %vm287_vm1, %v1615_v20, %v1616_v29  ;;  %v717_v20 = vrot.slane %v3425_v48, 2  ;;  %v722_v29 = vrot.slane %v3448_v55, 2 }
  0x38   : > { %2767 = vmatprep.subr.msk.mxu0 %vm361_vm0, %v3481_v8 }
  0x39   : > { %2603 = vmatmul.mubr.msk.f32.gmra.mrb[10].mxu1 %vm328_vm2, %v3498_v16  ;;  %v3588_v24 = vsel %vm690_vm3, %v716_v19, %v717_v20  ;;  %v3601_v49 = vsel %vm690_vm3, %v717_v20, %v719_v22  ;;  %v3605_v39 = vsel %vm690_vm3, %v721_v28, %v722_v29  ;;  %v3627_v63 = vsel %vm690_vm3, %v722_v29, %v724_v37  ;;  %v3638_v22 = vld [vmem:[%s3308_s11 + $0xd0] sm:$0x3]  ;;  %v262_v37 = vld [vmem:[%s4033_s1 + $0x20] sm:$0xf]  ;;  %s3086_s11 = scalar_lea.vmem %s3976_s30, 128 }
  0x3a   : > { %2721 = vmatmul.mubr.msk.f32.gmra.mrb[2].mxu0 %vm328_vm2, %v3501_v17  ;;  %2605 = vmatprep.mubr.msk.f32.mxu1 %vm328_vm2, %v3514_v23  ;;  %v1271_v19 = vrot.slane %v3612_v45, 2  ;;  %v1272_v20 = vrot.slane %v3615_v46, 2  ;;  %v1274_v40 = vrot.slane %v3638_v22, 2  ;;  %p3087_p0 = scmp.ne.s32.totalorder %s3976_s30, %s3086_s11  ;;  %p3094_p5 = scmp.lt.s32.totalorder %s3092_s12, %s3086_s11 }
  0x3b   : > { %2723 = vmatprep.mubr.msk.f32.mxu0 %vm328_vm2, %v3524_v30 }
  0x3c   : > { %v3654_v28 = vsel %vm690_vm3, %v1271_v19, %v1272_v20  ;;  %v3665_v29 = vsel %vm690_vm3, %v1272_v20, %v1274_v40  ;;  %p3088_p1 = pnand %p3087_p0, %p3259_p3  ;;  %p3095_p6 = por %p3094_p5, %p3093_p4 }
  0x3d   : > { %2606 = vmatmul.mubr.msk.f32.gmra.mrb[12].mxu1 %vm328_vm2, %v3549_v53 }
  0x3e   : > { %2724 = vmatmul.mubr.msk.f32.gmra.mrb[4].mxu0 %vm328_vm2, %v3558_v59  ;;  %2608 = vmatprep.mubr.msk.f32.mxu1 %vm328_vm2, %v3561_v60  ;;  %p3089_p2 = pneg %p3088_p1 }
  0x3f   : > { %2726 = vmatprep.mubr.msk.f32.mxu0 %vm328_vm2, %v3568_v62 }
  0x40   : > { %p3096_p7 = pnand %p3095_p6, %p3089_p2 }
  0x41   : > { %2609 = vmatmul.mubr.msk.f32.gmra.mrb[14].mxu1 %vm328_vm2, %v3579_v41 }
  0x42   : > { %2727 = vmatmul.mubr.msk.f32.gmra.mrb[6].mxu0 %vm328_vm2, %v3584_v7  ;;  %2613 = vmatprep.mubr.msk.f32.mxu1 %vm328_vm2, %v3311_v4 }
  0x43   : > { %2729 = vmatprep.mubr.msk.f32.mxu0 %vm328_vm2, %v3588_v24 }
  0x45   : > { %2614 = vmatmul.mubr.msk.f32.vlgmr.msra.gmra.mrb[0].mxu1 %vm328_vm2, %v3314_v5 }
  0x46   : > { %2730 = vmatmul.mubr.msk.f32.gmra.mrb[8].mxu0 %vm328_vm2, %v3601_v49  ;;  %2616 = vmatprep.mubr.msk.f32.mxu1 %vm328_vm2, %v3317_v6 }
  0x47   : > { %2732 = vmatprep.mubr.msk.f32.mxu0 %vm328_vm2, %v3605_v39  ;;  %2638 = vmatpush3.msk.msra.mxu1 %vm361_vm0, %v3383_v35  ;;  %v3650_v35 = vsel %vm690_vm3, %v727_v43, %v729_v57  ;;  %v694_v43 = vrot.slane %v3326_v11, 2  ;;  %v1099_v11 = vrot.slane %v3615_v46, 1 }
  0x48   : > { %2663 = vmatprep.subr.msk.mxu1 %vm361_vm0, %v257_v52 }
  0x49   : > { %2617 = vmatmul.mubr.msk.f32.gmra.mrb[2].mxu1 %vm328_vm2, %v3322_v9 }
  0x4a   : > { %2733 = vmatmul.mubr.msk.f32.gmra.mrb[10].mxu0 %vm328_vm2, %v3627_v63  ;;  %2619 = vmatprep.mubr.msk.f32.mxu1 %vm328_vm2, %v3334_v15 }
  0x4b   : > { %2735 = vmatprep.mubr.msk.f32.mxu0 %vm328_vm2, %v3633_v61 }
  0x4d   : > { %2620 = vmatmul.mubr.msk.f32.gmra.mrb[4].mxu1 %vm328_vm2, %v3339_v18 }
  0x4e   : > { %2736 = vmatmul.mubr.msk.f32.gmra.mrb[12].mxu0 %vm328_vm2, %v3650_v35  ;;  %2622 = vmatprep.mubr.msk.f32.mxu1 %vm328_vm2, %v3351_v25 }
  0x4f   : > { %2738 = vmatprep.mubr.msk.f32.mxu0 %vm328_vm2, %v3654_v28 }
  0x51   : > { %2623 = vmatmul.mubr.msk.f32.gmra.mrb[6].mxu1 %vm328_vm2, %v3354_v26 }
  0x52   : > { %2739 = vmatmul.mubr.msk.f32.gmra.mrb[14].mxu0 %vm328_vm2, %v3665_v29  ;;  %2625 = vmatprep.mubr.msk.f32.mxu1 %vm328_vm2, %v3365_v31 }
  0x53   : > { %2743 = vmatprep.mubr.msk.f32.mxu0 %vm328_vm2, %v3334_v15 }
  0x55   : > { %2626 = vmatmul.mubr.msk.f32.gmra.mrb[8].mxu1 %vm328_vm2, %v3368_v32 }
  0x56   : > { %2744 = vmatmul.mubr.msk.f32.vlgmr.msra.gmra.mrb[0].mxu0 %vm328_vm2, %v3339_v18  ;;  %2628 = vmatprep.mubr.msk.f32.mxu1 %vm328_vm2, %v3422_v47 }
  0x57   : > { %2768 = vmatpush3.msk.msra.mxu0 %vm361_vm0, %v3481_v8  ;;  %2746 = vmatprep.mubr.msk.f32.mxu0 %vm328_vm2, %v3351_v25  ;;  %v692_v8 = vrot.slane %v3314_v5, 2  ;;  %v1098_v5 = vrot.slane %v3612_v45, 1 }
  0x58   : > { %2793 = vmatprep.subr.msk.mxu0 %vm361_vm0, %v262_v37 }
  0x59   : > { %2629 = vmatmul.mubr.msk.f32.gmra.mrb[10].mxu1 %vm328_vm2, %v3425_v48  ;;  %v693_v57 = vsel %vm690_vm3, %v691_v27, %v692_v8  ;;  %v695_v4 = vsel %vm690_vm3, %v692_v8, %v694_v43 }
  0x5a   : > { %2747 = vmatmul.mubr.msk.f32.gmra.mrb[2].mxu0 %vm328_vm2, %v3354_v26  ;;  %2631 = vmatprep.mubr.msk.f32.mxu1 %vm328_vm2, %v3445_v54 }
  0x5b   : > { %2749 = vmatprep.mubr.msk.f32.mxu0 %vm328_vm2, %v3365_v31 }
  0x5d   : > { %2632 = vmatmul.mubr.msk.f32.gmra.mrb[12].mxu1 %vm328_vm2, %v3448_v55 }
  0x5e   : > { %2750 = vmatmul.mubr.msk.f32.gmra.mrb[4].mxu0 %vm328_vm2, %v3368_v32  ;;  %2634 = vmatprep.mubr.msk.f32.mxu1 %vm328_vm2, %v3487_v12 }
  0x5f   : > { %2752 = vmatprep.mubr.msk.f32.mxu0 %vm328_vm2, %v3422_v47 }
  0x61   : > { %2635 = vmatmul.mubr.msk.f32.gmra.mrb[14].mxu1 %vm328_vm2, %v3490_v13 }
  0x62   : > { %2753 = vmatmul.mubr.msk.f32.gmra.mrb[6].mxu0 %vm328_vm2, %v3425_v48  ;;  %2639 = vmatprep.mubr.msk.f32.mxu1 %vm328_vm2, %v693_v57 }
  0x63   : > { %2755 = vmatprep.mubr.msk.f32.mxu0 %vm328_vm2, %v3445_v54 }
  0x65   : > { %2640 = vmatmul.mubr.msk.f32.vlgmr.msra.gmra.mrb[0].mxu1 %vm328_vm2, %v695_v4 }
  0x66   : > { %2756 = vmatmul.mubr.msk.f32.gmra.mrb[8].mxu0 %vm328_vm2, %v3448_v55  ;;  %2642 = vmatprep.mubr.msk.f32.mxu1 %vm328_vm2, %v3451_v56 }
  0x67   : > { %2758 = vmatprep.mubr.msk.f32.mxu0 %vm328_vm2, %v3487_v12  ;;  %2664 = vmatpush3.msk.msra.mxu1 %vm361_vm0, %v257_v52 }
  0x68   : > { %2819 = vmatprep.subr.msk.mxu1 %vm361_vm0, %v3282_v0 }
  0x69   : > { %2643 = vmatmul.mubr.msk.f32.gmra.mrb[2].mxu1 %vm328_vm2, %v3471_v1 }
  0x6a   : > { %2759 = vmatmul.mubr.msk.f32.gmra.mrb[10].mxu0 %vm328_vm2, %v3490_v13  ;;  %2645 = vmatprep.mubr.msk.f32.mxu1 %vm328_vm2, %v3484_v10 }
  0x6b   : > { %2761 = vmatprep.mubr.msk.f32.mxu0 %vm328_vm2, %v3612_v45 }
  0x6d   : > { %2646 = vmatmul.mubr.msk.f32.gmra.mrb[4].mxu1 %vm328_vm2, %v3501_v17 }
  0x6e   : > { %2762 = vmatmul.mubr.msk.f32.gmra.mrb[12].mxu0 %vm328_vm2, %v3615_v46  ;;  %2648 = vmatprep.mubr.msk.f32.mxu1 %vm328_vm2, %v3524_v30 }
  0x6f   : > { %2764 = vmatprep.mubr.msk.f32.mxu0 %vm328_vm2, %v3493_v14 }
  0x71   : > { %2649 = vmatmul.mubr.msk.f32.gmra.mrb[6].mxu1 %vm328_vm2, %v3558_v59 }
  0x72   : > { %2765 = vmatmul.mubr.msk.f32.gmra.mrb[14].mxu0 %vm328_vm2, %v3506_v21  ;;  %2651 = vmatprep.mubr.msk.f32.mxu1 %vm328_vm2, %v3568_v62 }
  0x73   : > { %2769 = vmatprep.mubr.msk.f32.mxu0 %vm328_vm2, %v3378_v34  ;;  %v1100_v34 = vsel %vm287_vm1, %v1098_v5, %v1099_v11 }
  0x75   : > { %2652 = vmatmul.mubr.msk.f32.gmra.mrb[8].mxu1 %vm328_vm2, %v3584_v7 }
  0x76   : > { %2770 = vmatmul.mubr.msk.f32.vlgmr.msra.gmra.mrb[0].mxu0 %vm328_vm2, %v3389_v36  ;;  %2654 = vmatprep.mubr.msk.f32.mxu1 %vm328_vm2, %v3588_v24 }
  0x77   : > { %2794 = vmatpush3.msk.msra.mxu0 %vm361_vm0, %v262_v37  ;;  %2772 = vmatprep.mubr.msk.f32.mxu0 %vm328_vm2, %v3393_v38 }
  0x79   : > { %2655 = vmatmul.mubr.msk.f32.gmra.mrb[10].mxu1 %vm328_vm2, %v3601_v49 }
  0x7a   : > { %2773 = vmatmul.mubr.msk.f32.gmra.mrb[2].mxu0 %vm328_vm2, %v3413_v42  ;;  %2657 = vmatprep.mubr.msk.f32.mxu1 %vm328_vm2, %v3605_v39  ;;  %v3882_v42 = vld [vmem:[%s4034_s2] ss:$0 sm:$0xff] }
  0x7b   : > { %2775 = vmatprep.mubr.msk.f32.mxu0 %vm328_vm2, %v3417_v44 }
  0x7d   : > { %2658 = vmatmul.mubr.msk.f32.gmra.mrb[12].mxu1 %vm328_vm2, %v3627_v63 }
  0x7e   : > { %2776 = vmatmul.mubr.msk.f32.gmra.mrb[4].mxu0 %vm328_vm2, %v3440_v51  ;;  %2660 = vmatprep.mubr.msk.f32.mxu1 %vm328_vm2, %v3633_v61  ;;  %v3887_v51 = vld [vmem:[%s4035_s3] ss:$0 sm:$0xff] }
  0x7f   : > { %2778 = vmatprep.mubr.msk.f32.mxu0 %vm328_vm2, %v3474_v2 }
  0x81   : > { %2661 = vmatmul.mubr.msk.f32.gmra.mrb[14].mxu1 %vm328_vm2, %v3650_v35 }
  0x82   : > { %2779 = vmatmul.mubr.msk.f32.gmra.mrb[6].mxu0 %vm328_vm2, %v3498_v16  ;;  %2665 = vmatprep.mubr.msk.f32.mxu1 %vm328_vm2, %v3317_v6  ;;  %v1101_v6 = vrot.slane %v3638_v22, 1 }
  0x83   : > { %2781 = vmatprep.mubr.msk.f32.mxu0 %vm328_vm2, %v3514_v23 }
  0x85   : > { %2666 = vmatmul.mubr.msk.f32.vlgmr.msra.gmra.mrb[0].mxu1 %vm328_vm2, %v3322_v9  ;;  %v1102_v9 = vsel %vm287_vm1, %v1099_v11, %v1101_v6 }
  0x86   : > { %2782 = vmatmul.mubr.msk.f32.gmra.mrb[8].mxu0 %vm328_vm2, %v3549_v53  ;;  %2668 = vmatprep.mubr.msk.f32.mxu1 %vm328_vm2, %v3334_v15 }
  0x87   : > { %2784 = vmatprep.mubr.msk.f32.mxu0 %vm328_vm2, %v3561_v60  ;;  %2820 = vmatpush3.msk.msra.mxu1 %vm361_vm0, %v3282_v0 }
  0x89   : > { %2669 = vmatmul.mubr.msk.f32.gmra.mrb[2].mxu1 %vm328_vm2, %v3339_v18 }
  0x8a   : > { %2785 = vmatmul.mubr.msk.f32.gmra.mrb[10].mxu0 %vm328_vm2, %v3579_v41  ;;  %2671 = vmatprep.mubr.msk.f32.mxu1 %vm328_vm2, %v3351_v25 }
  0x8b   : > { %2787 = vmatprep.mubr.msk.f32.mxu0 %vm328_vm2, %v1100_v34 }
  0x8d   : > { %2672 = vmatmul.mubr.msk.f32.gmra.mrb[4].mxu1 %vm328_vm2, %v3354_v26 }
  0x8e   : > { %2788 = vmatmul.mubr.msk.f32.gmra.mrb[12].mxu0 %vm328_vm2, %v1102_v9  ;;  %2674 = vmatprep.mubr.msk.f32.mxu1 %vm328_vm2, %v3365_v31 }
  0x8f   : > { %2790 = vmatprep.mubr.msk.f32.mxu0 %vm328_vm2, %v3537_v33 }
  0x91   : > { %2675 = vmatmul.mubr.msk.f32.gmra.mrb[6].mxu1 %vm328_vm2, %v3368_v32 }
  0x92   : > { %2791 = vmatmul.mubr.msk.f32.gmra.mrb[14].mxu0 %vm328_vm2, %v3553_v58  ;;  %2677 = vmatprep.mubr.msk.f32.mxu1 %vm328_vm2, %v3422_v47 }
  0x93   : > { %2795 = vmatprep.mubr.msk.f32.mxu0 %vm328_vm2, %v3484_v10 }
  0x95   : > { %2678 = vmatmul.mubr.msk.f32.gmra.mrb[8].mxu1 %vm328_vm2, %v3425_v48 }
  0x96   : > { %2796 = vmatmul.mubr.msk.f32.vlgmr.msra.gmra.mrb[0].mxu0 %vm328_vm2, %v3501_v17  ;;  %2680 = vmatprep.mubr.msk.f32.mxu1 %vm328_vm2, %v3445_v54 }
  0x97   : > { %2798 = vmatprep.mubr.msk.f32.mxu0 %vm328_vm2, %v3524_v30 }
  0x99   : > { %2681 = vmatmul.mubr.msk.f32.gmra.mrb[10].mxu1 %vm328_vm2, %v3448_v55 }
  0x9a   : > { %2799 = vmatmul.mubr.msk.f32.gmra.mrb[2].mxu0 %vm328_vm2, %v3558_v59  ;;  %2683 = vmatprep.mubr.msk.f32.mxu1 %vm328_vm2, %v3487_v12 }
  0x9b   : > { %2801 = vmatprep.mubr.msk.f32.mxu0 %vm328_vm2, %v3568_v62 }
  0x9d   : > { %2684 = vmatmul.mubr.msk.f32.gmra.mrb[12].mxu1 %vm328_vm2, %v3490_v13 }
  0x9e   : > { %2802 = vmatmul.mubr.msk.f32.gmra.mrb[4].mxu0 %vm328_vm2, %v3584_v7  ;;  %2686 = vmatprep.mubr.msk.f32.mxu1 %vm328_vm2, %v3612_v45 }
  0x9f   : > { %2804 = vmatprep.mubr.msk.f32.mxu0 %vm328_vm2, %v3588_v24 }
  0xa1   : > { %2687 = vmatmul.mubr.msk.f32.gmra.mrb[14].mxu1 %vm328_vm2, %v3615_v46 }
  0xa2   : > { %2805 = vmatmul.mubr.msk.f32.gmra.mrb[6].mxu0 %vm328_vm2, %v3601_v49  ;;  %2703 = vmatprep.mubr.msk.f32.mxu1 %vm328_vm2, %v3474_v2 }
  0xa3   : > { %2807 = vmatprep.mubr.msk.f32.mxu0 %vm328_vm2, %v3605_v39 }
  0xa5   : > { %2704 = vmatmul.mubr.msk.f32.vlgmr.msra.gmra.mrb[8].mxu1 %vm328_vm2, %v3498_v16 }
  0xa6   : > { %2808 = vmatmul.mubr.msk.f32.gmra.mrb[8].mxu0 %vm328_vm2, %v3627_v63  ;;  %2706 = vmatprep.mubr.msk.f32.mxu1 %vm328_vm2, %v3514_v23 }
  0xa7   : > { %2810 = vmatprep.mubr.msk.f32.mxu0 %vm328_vm2, %v3633_v61 }
  0xa9   : > { %2707 = vmatmul.mubr.msk.f32.gmra.mrb[10].mxu1 %vm328_vm2, %v3549_v53 }
  0xaa   : > { %2811 = vmatmul.mubr.msk.f32.gmra.mrb[10].mxu0 %vm328_vm2, %v3650_v35  ;;  %2709 = vmatprep.mubr.msk.f32.mxu1 %vm328_vm2, %v3561_v60 }
  0xab   : > { %2813 = vmatprep.mubr.msk.f32.mxu0 %vm328_vm2, %v3654_v28 }
  0xad   : > { %2710 = vmatmul.mubr.msk.f32.gmra.mrb[12].mxu1 %vm328_vm2, %v3579_v41 }
  0xae   : > { %2814 = vmatmul.mubr.msk.f32.gmra.mrb[12].mxu0 %vm328_vm2, %v3665_v29  ;;  %2712 = vmatprep.mubr.msk.f32.mxu1 %vm328_vm2, %v1100_v34 }
  0xaf   : > { %2816 = vmatprep.mubr.msk.f32.mxu0 %vm328_vm2, %v3542_v50 }
  0xb1   : > { %2713 = vmatmul.mubr.msk.f32.gmra.mrb[14].mxu1 %vm328_vm2, %v1102_v9 }
  0xb2   : > { %2817 = vmatmul.mubr.msk.f32.gmra.mrb[14].mxu0 %vm328_vm2, %v3565_v3 }
 0x158   : > { %v2667_v0 = vpop.f32.mrb[0].mxu1 }
 0x159   : > { %v1002_v15 = vpop.f32.mrb[1].mxu1 }
 0x15c   : > { %v2670_v18 = vpop.f32.mrb[2].mxu1 }
 0x15d   : > { %v1012_v25 = vpop.f32.mrb[3].mxu1 }
 0x160   : > { %v2673_v26 = vpop.f32.mrb[4].mxu1 }
 0x161   : > { %v1022_v31 = vpop.f32.mrb[5].mxu1 }
 0x164   : > { %v2676_v32 = vpop.f32.mrb[6].mxu1 }
 0x165   : > { %v1032_v36 = vpop.f32.mrb[7].mxu1 }
 0x169   : > { %v2797_v38 = vpop.f32.mrb[0].mxu0 }
 0x16a   : > { %v2821_v44 = vadd.f32 %v2797_v38, %v2667_v0  ;;  %v1866_v47 = vpop.f32.mrb[1].mxu0 }
 0x16b   : > { %v2822_v48 = vadd.f32 %v1866_v47, %v1002_v15 }
 0x16c   : > { %v1969_v54 = vmul.f32 %v2821_v44, %v3882_v42 }
 0x16d   : > { %v1968_v55 = vmul.f32 %v2822_v48, %v3882_v42  ;;  %v2800_v56 = vpop.f32.mrb[2].mxu0 }
 0x16e   : > { %v2823_v1 = vadd.f32 %v2800_v56, %v2670_v18  ;;  %v1876_v2 = vpop.f32.mrb[3].mxu0  ;;  %v3892_v10 = vadd.f32 %v3887_v51, %v1969_v54 }
 0x16f   : > { %v2824_v12 = vadd.f32 %v1876_v2, %v1012_v25  ;;  %v3895_v13 = vadd.f32 %v3887_v51, %v1968_v55 }
 0x170   : > { %v1971_v14 = vmul.f32 %v2823_v1, %v3882_v42  ;;  %v2412_v16 = vmul.f32 -1.442695, %v3892_v10 }
 0x171   : > { %v1970_v17 = vmul.f32 %v2824_v12, %v3882_v42  ;;  %v2803_v21 = vpop.f32.mrb[4].mxu0  ;;  %v2411_v23 = vmul.f32 -1.442695, %v3895_v13 }
 0x172   : > { %v2825_v30 = vadd.f32 %v2803_v21, %v2673_v26  ;;  %v1886_v33 = vpop.f32.mrb[5].mxu0  ;;  %3022 = vpow2.f32 %v2412_v16  ;;  %v3902_v50 = vadd.f32 %v3887_v51, %v1971_v14 }
 0x173   : > { %v2826_v53 = vadd.f32 %v1886_v33, %v1022_v31  ;;  %3024 = vpow2.f32 %v2411_v23  ;;  %v3905_v58 = vadd.f32 %v3887_v51, %v1970_v17 }
 0x174   : > { %v1973_v59 = vmul.f32 %v2825_v30, %v3882_v42  ;;  %v2414_v41 = vmul.f32 -1.442695, %v3902_v50 }
 0x175   : > { %v1972_v60 = vmul.f32 %v2826_v53, %v3882_v42  ;;  %v2806_v3 = vpop.f32.mrb[6].mxu0  ;;  %v2413_v62 = vmul.f32 -1.442695, %v3905_v58 }
 0x176   : > { %v2827_v7 = vadd.f32 %v2806_v3, %v2676_v32  ;;  %v1896_v24 = vpop.f32.mrb[7].mxu0  ;;  %v3917_v19 = vadd.f32 %v3887_v51, %v1973_v59 }
 0x177   : > { %v2828_v49 = vadd.f32 %v1896_v24, %v1032_v36  ;;  %3026 = vpow2.f32 %v2413_v62  ;;  %v3912_v39 = vadd.f32 %v3887_v51, %v1972_v60 }
 0x178   : > { %v2705_v45 = vpop.f32.mrb[8].mxu1  ;;  %3028 = vpow2.f32 %v2414_v41  ;;  %v1975_v37 = vmul.f32 %v2827_v7, %v3882_v42  ;;  %v2416_v43 = vmul.f32 -1.442695, %v3917_v19 }
 0x179   : > { %v1974_v46 = vmul.f32 %v2828_v49, %v3882_v42  ;;  %v2809_v52 = vpop.f32.mrb[8].mxu0  ;;  %v1216_v63 = vpop.f32.mrb[9].mxu1  ;;  %v2415_v61 = vmul.f32 -1.442695, %v3912_v39 }
 0x17a   : > { %v2829_v20 = vadd.f32 %v2809_v52, %v2705_v45  ;;  %v1906_v22 = vpop.f32.mrb[9].mxu0  ;;  %v3927_v31 = vadd.f32 %v3887_v51, %v1975_v37 }
 0x17b   : > { %v2830_v35 = vadd.f32 %v1906_v22, %v1216_v63  ;;  %3030 = vpow2.f32 %v2415_v61  ;;  %v3922_v57 = vadd.f32 %v3887_v51, %v1974_v46 }
 0x17c   : > { %v3023_v40 = vpop.eup %3022  ;;  %v2708_v28 = vpop.f32.mrb[10].mxu1  ;;  %v1977_v54 = vmul.f32 %v2829_v20, %v3882_v42  ;;  %v2418_v1 = vmul.f32 -1.442695, %v3927_v31 }
 0x17d   : > { %v3025_v29 = vpop.eup %3024  ;;  %v2812_v27 = vpop.f32.mrb[10].mxu0  ;;  %v2056_v6 = vadd.f32 1.0, %v3023_v40  ;;  %v1976_v15 = vmul.f32 %v2830_v35, %v3882_v42  ;;  %v2417_v26 = vmul.f32 -1.442695, %v3922_v57 }
 0x17e   : > { %v1226_v8 = vpop.f32.mrb[11].mxu1  ;;  %v2831_v4 = vadd.f32 %v2812_v27, %v2708_v28  ;;  %v1916_v5 = vpop.f32.mrb[11].mxu0  ;;  %v2055_v11 = vadd.f32 1.0, %v3025_v29  ;;  %v3937_v33 = vadd.f32 %v3887_v51, %v1977_v54 }
 0x17f   : > { %v2832_v34 = vadd.f32 %v1916_v5, %v1226_v8  ;;  %v3932_v2 = vadd.f32 %v3887_v51, %v1976_v15 }
 0x180   : > { %v2711_v9 = vpop.f32.mrb[12].mxu1  ;;  %3032 = vrcp.f32 %v2055_v11  ;;  %v1979_v41 = vmul.f32 %v2831_v4, %v3882_v42  ;;  %v2420_v7 = vmul.f32 -1.442695, %v3937_v33 }
 0x181   : > { %v3027_v0 = vpop.eup %3026  ;;  %v2815_v18 = vpop.f32.mrb[12].mxu0  ;;  %3034 = vpow2.f32 %v2416_v43  ;;  %v1978_v23 = vmul.f32 %v2832_v34, %v3882_v42  ;;  %v2419_v30 = vmul.f32 -1.442695, %v3932_v2 }
 0x182   : > { %v1236_v25 = vpop.f32.mrb[13].mxu1  ;;  %v2833_v32 = vadd.f32 %v2815_v18, %v2711_v9  ;;  %v1926_v36 = vpop.f32.mrb[13].mxu0  ;;  %3036 = vrcp.f32 %v2056_v6  ;;  %v2057_v38 = vadd.f32 1.0, %v3027_v0  ;;  %v3949_v61 = vadd.f32 %v3887_v51, %v1979_v41 }
 0x183   : > { %v3029_v44 = vpop.eup %3028  ;;  %v2834_v47 = vadd.f32 %v1926_v36, %v1236_v25  ;;  %3038 = vpow2.f32 %v2417_v26  ;;  %v3943_v24 = vadd.f32 %v3887_v51, %v1978_v23 }
 0x184   : > { %v2714_v48 = vpop.f32.mrb[14].mxu1  ;;  %3040 = vrcp.f32 %v2057_v38  ;;  %v2058_v16 = vadd.f32 1.0, %v3029_v44  ;;  %v1981_v28 = vmul.f32 %v2833_v32, %v3882_v42 }
 0x185   : > { %v2818_v55 = vpop.f32.mrb[14].mxu0  ;;  %v1246_v56 = vpop.f32.mrb[15].mxu1  ;;  %3042 = vpow2.f32 %v2418_v1  ;;  %v1980_v63 = vmul.f32 %v2834_v47, %v3882_v42 }
 0x186   : > { %v2835_v12 = vadd.f32 %v2818_v55, %v2714_v48  ;;  %v1936_v14 = vpop.f32.mrb[15].mxu0  ;;  %v3031_v17 = vpop.eup %3030  ;;  %3044 = vrcp.f32 %v2058_v16  ;;  %v2004_v5 = vadd.f32 %v3887_v51, %v1981_v28 }
 0x187   : > { %v2836_v21 = vadd.f32 %v1936_v14, %v1246_v56  ;;  %v2059_v59 = vadd.f32 1.0, %v3031_v17  ;;  %3046 = vpow2.f32 %v2419_v30  ;;  %v3955_v29 = vadd.f32 %v3887_v51, %v1980_v63 }
 0x188   : > { %v1983_v0 = vmul.f32 %v2835_v12, %v3882_v42 }
 0x189   : > { %3048 = vrcp.f32 %v2059_v59  ;;  %v1982_v4 = vmul.f32 %v2836_v21, %v3882_v42 }
 0x18a   : > { %v3033_v53 = vpop.eup %3032  ;;  %3050 = vpow2.f32 %v2420_v7  ;;  %v2006_v38 = vadd.f32 %v3887_v51, %v1983_v0 }
 0x18b   : > { %v3035_v60 = vpop.eup %3034  ;;  %v2103_v3 = vmul.f32 %v3033_v53, %v3895_v13  ;;  %v2421_v13 = vmul.f32 -1.442695, %v3943_v24  ;;  %v2005_v15 = vadd.f32 %v3887_v51, %v1982_v4 }
 0x18c   : > { %v3037_v62 = vpop.eup %3036  ;;  %v2060_v49 = vadd.f32 1.0, %v3035_v60  ;;  %v2426_v48 = vmul.f32 -1.442695, %v2006_v38 }
 0x18d   : > { %2119 = vxpose.xlu0.b32.start [1/16] (narrow) %v2103_v3, 8  ;;  %v3039_v45 = vpop.eup %3038  ;;  %v2104_v46 = vmul.f32 %v3037_v62, %v3892_v10  ;;  %v2422_v10 = vmul.f32 -1.442695, %v3949_v61  ;;  %v2425_v36 = vmul.f32 -1.442695, %v2005_v15 }
 0x18e   : > { %v3041_v52 = vpop.eup %3040  ;;  %3052 = vrcp.f32 %v2060_v49  ;;  %v2061_v20 = vadd.f32 1.0, %v3039_v45 }
 0x18f   : > { %v3043_v22 = vpop.eup %3042  ;;  %v2105_v35 = vmul.f32 %v3041_v52, %v3905_v58  ;;  %3054 = vpow2.f32 %v2421_v13  ;;  %v2423_v58 = vmul.f32 -1.442695, %v3955_v29 }
 0x190   : > { %v3045_v40 = vpop.eup %3044  ;;  %3056 = vrcp.f32 %v2061_v20  ;;  %v2062_v37 = vadd.f32 1.0, %v3043_v22 }
 0x191   : > { %2120 = vxpose.xlu0.b32.cont [2/16] (narrow) %v2104_v46, 8  ;;  %v3047_v27 = vpop.eup %3046  ;;  %v2106_v8 = vmul.f32 %v3045_v40, %v3902_v50  ;;  %3058 = vpow2.f32 %v2422_v10  ;;  %v2424_v50 = vmul.f32 -1.442695, %v2004_v5 }
 0x192   : > { %3060 = vrcp.f32 %v2062_v37  ;;  %v2063_v11 = vadd.f32 1.0, %v3047_v27 }
 0x193   : > { %v3049_v43 = vpop.eup %3048  ;;  %3062 = vpow2.f32 %v2423_v58 }
 0x194   : > { %v3051_v6 = vpop.eup %3050  ;;  %v2107_v34 = vmul.f32 %v3049_v43, %v3912_v39  ;;  %3064 = vrcp.f32 %v2063_v11 }
 0x195   : > { %2121 = vxpose.xlu0.b32.cont [3/16] (narrow) %v2105_v35, 8  ;;  %v2064_v18 = vadd.f32 1.0, %v3051_v6  ;;  %3066 = vpow2.f32 %v2424_v50 }
 0x197   : > { %3068 = vrcp.f32 %v2064_v18 }
 0x198   : > { %v3053_v9 = vpop.eup %3052  ;;  %3070 = vpow2.f32 %v2425_v36 }
 0x199   : > { %2122 = vxpose.xlu0.b32.cont [4/16] (narrow) %v2106_v8, 8  ;;  %v3055_v25 = vpop.eup %3054  ;;  %v2108_v26 = vmul.f32 %v3053_v9, %v3917_v19 }
 0x19a   : > { %v3057_v32 = vpop.eup %3056  ;;  %v2065_v39 = vadd.f32 1.0, %v3055_v25 }
 0x19b   : > { %v3059_v44 = vpop.eup %3058  ;;  %v2109_v42 = vmul.f32 %v3057_v32, %v3922_v57 }
 0x19c   : > { %v3061_v47 = vpop.eup %3060  ;;  %3072 = vrcp.f32 %v2065_v39  ;;  %v2066_v54 = vadd.f32 1.0, %v3059_v44 }
 0x19d   : > { %2123 = vxpose.xlu0.b32.cont [5/16] (narrow) %v2107_v34, 8  ;;  %v3063_v55 = vpop.eup %3062  ;;  %v2110_v19 = vmul.f32 %v3061_v47, %v3927_v31  ;;  %3074 = vpow2.f32 %v2426_v48 }
 0x19e   : > { %v3065_v56 = vpop.eup %3064  ;;  %3076 = vrcp.f32 %v2066_v54  ;;  %v2067_v1 = vadd.f32 1.0, %v3063_v55 }
 0x19f   : > { %v3067_v51 = vpop.eup %3066  ;;  %v2111_v12 = vmul.f32 %v3065_v56, %v3932_v2 }
 0x1a0   : > { %3078 = vrcp.f32 %v2067_v1  ;;  %v2068_v57 = vadd.f32 1.0, %v3067_v51 }
 0x1a1   : > { %2124 = vxpose.xlu0.b32.cont [6/16] (narrow) %v2108_v26, 8  ;;  %v3069_v14 = vpop.eup %3068 }
 0x1a2   : > { %v3071_v16 = vpop.eup %3070  ;;  %v2112_v17 = vmul.f32 %v3069_v14, %v3937_v33  ;;  %3080 = vrcp.f32 %v2068_v57 }
 0x1a3   : > { %v2069_v23 = vadd.f32 1.0, %v3071_v16 }
 0x1a5   : > { %2125 = vxpose.xlu0.b32.cont [7/16] (narrow) %v2109_v42, 8  ;;  %3082 = vrcp.f32 %v2069_v23 }
 0x1a6   : > { %v3073_v21 = vpop.eup %3072 }
 0x1a7   : > { %v3075_v31 = vpop.eup %3074  ;;  %v2113_v30 = vmul.f32 %v3073_v21, %v3943_v24 }
 0x1a8   : > { %v3077_v53 = vpop.eup %3076  ;;  %v2070_v59 = vadd.f32 1.0, %v3075_v31 }
 0x1a9   : > { %2126 = vxpose.xlu0.b32.cont [8/16] (narrow) %v2110_v19, 8  ;;  %v2114_v2 = vmul.f32 %v3077_v53, %v3949_v61 }
 0x1aa   : > { %v3079_v60 = vpop.eup %3078  ;;  %3084 = vrcp.f32 %v2070_v59 }
 0x1ab   : > { %v2115_v33 = vmul.f32 %v3079_v60, %v3955_v29 }
 0x1ac   : > { %v3081_v3 = vpop.eup %3080 }
 0x1ad   : > { %2127 = vxpose.xlu0.b32.cont [9/16] (narrow) %v2111_v12, 8  ;;  %v2116_v62 = vmul.f32 %v3081_v3, %v2004_v5 }
 0x1af   : > { %v3083_v41 = vpop.eup %3082 }
 0x1b0   : > { %v2117_v7 = vmul.f32 %v3083_v41, %v2005_v15 }
 0x1b1   : > { %2128 = vxpose.xlu0.b32.cont [10/16] (narrow) %v2112_v17, 8 }
 0x1b4   : > { %v3085_v24 = vpop.eup %3084 }
 0x1b5   : > { %2129 = vxpose.xlu0.b32.cont [11/16] (narrow) %v2113_v30, 8  ;;  %v2118_v49 = vmul.f32 %v3085_v24, %v2006_v38 }
 0x1b9   : > { %2130 = vxpose.xlu0.b32.cont [12/16] (narrow) %v2114_v2, 8 }
 0x1bd   : > { %2131 = vxpose.xlu0.b32.cont [13/16] (narrow) %v2115_v33, 8 }
 0x1c1   : > { %2132 = vxpose.xlu0.b32.cont [14/16] (narrow) %v2116_v62, 8 }
 0x1c5   : > { %2133 = vxpose.xlu0.b32.cont [15/16] (narrow) %v2117_v7, 8 }
 0x1c9   : > { %2134 = vxpose.xlu0.b32.end [16/16] (narrow) %v2118_v49, 8 }
 0x20d   : > { %v2135_v45 = vpop.trf.xlu0 }
 0x20e   : > { %2151 = vst [vmem:[%s214_s27] sm:$0xff] %v2135_v45 }
 0x20f   : > { %3099 = shalt.err (!%p3096_p7)
}
 0x210   : > { %s3100_s13 = scalar_lea.hbm %s3981_s9, 128  ;;  %s3104_s24 = scalar_lea.hbm %s4036_s4, 512 }
 0x211   : > { %p3101_p9 = scmp.ne.s32.totalorder %s3981_s9, %s3100_s13  ;;  %p3105_p12 = scmp.lt.u32.totalorder %s3981_s9, %s4036_s4 }
 0x212   : > { %p3106_p13 = scmp.lt.u32.totalorder %s3104_s24, %s3100_s13  ;;  %p3108_p1 = scmp.lt.u32.totalorder %s3100_s13, %s3981_s9 }
 0x213   : > { %p3102_p10 = pnand %p3101_p9, %p3259_p3 }
 0x214   : > { %p3107_p0 = por %p3106_p13, %p3105_p12 }
 0x215   : > { %p3103_p11 = pneg %p3102_p10 }
 0x216   : > { %p3109_p2 = por %p3108_p1, %p3107_p0 }
 0x218   : > { %p3110_p4 = pnand %p3109_p2, %p3103_p11 }
 0x21a   : > { %3113 = shalt.err (!%p3110_p4)
}
 0x21b   : > { %2951 = dma.vmem_to_hbm [thread:$0]  (%p3259_p3), %s3976_s30, 128, %s3981_s9, %s2153_s10  }
 0x21c PF: > { %p2957_p5 = scmp.ge.s32.totalorder %s3180_s22, 2  ;;  %s2180_s6 = sand.u32 1, %s3152_s15  }
 0x21d   : > { %s2181_s8 = scalar_lea.sflag [#allocation3], %s2180_s6 }
 0x21e   : > { %p2954_p6 = pnand %p2957_p5, %p3268_p8 }
 0x220   : > { %3147 = dma.done.wait (!%p2954_p6), %s2181_s8, 128  }
 0x221   : > { %3149 = vsyncadd (!%p2954_p6), %s2181_s8, 4294967168  ;;  %s17_s22 = sadd.s32 1, %s3180_s22   ;;  %s4039_s15 = smov %s3156_s16 }
 0x222   : > { %p14_p7 = scmp.ge.s32.totalorder %s17_s22, 6   ;;  %s4040_s16 = smov %s3160_s17 }
 0x223   : > { %s4041_s17 = smov %s3277_s7  ;;  %s4042_s18 = smov %s3172_s20 }
 0x224   : > { %s4043_s19 = smov %s3176_s21  ;;  %s4044_s20 = smov %s4047_s25 }
 0x225   : > { %s4045_s21 = smov %s4051_s26  ;;  %16 = sbr.rel (!%p14_p7) target bundleno = 5 (0x5), region = 71 }
 0x22c   :  { %2186 = vsyncpa [#allocation3], 1 }
 0x22d   :  { %2188 = vsyncpa [#allocation3 + $0x1], 1 }

</bundles_post_ra>
